<compile_context>
chip_gen: v6e
topology: v6e:2x2x1
jax: 0.10.0
libtpu: 0.0.40
codegen_flags: <defaults>
</compile_context>

<pallas_src>
import jax
import jax.numpy as jnp
from jax.experimental import pallas as pl
from jax.experimental.pallas import tpu as pltpu


def gcn_kernel(feat_m_ref, feat_k_ref, adj_ref, w_ref, bias_ref,
               out_ref, ax_acc_ref):
    # feat_m_ref: (1, TM, Fin_p) bf16   rows of x for this output tile
    # feat_k_ref: (1, TK, Fin_p) bf16   rows of x for the adj contraction slab
    # adj_ref:    (1, TM, TK)    bf16
    # w_ref:      (2*Fin_p, Fout_p) bf16   [W1 ; W] stacked along contraction
    # bias_ref:   (1, Fout_p)    f32
    # out_ref:    (1, TM, Fout_p) f32
    # ax_acc_ref: (TM, Fin_p)    f32 VMEM accumulator for (adj @ x)
    k = pl.program_id(2)

    @pl.when(k == 0)
    def _():
        ax_acc_ref[...] = jnp.zeros_like(ax_acc_ref)

    # Accumulate (adj @ feature) for this row tile: bf16 MXU inputs, f32 acc.
    ax_acc_ref[...] += jnp.dot(adj_ref[0], feat_k_ref[0],
                               preferred_element_type=jnp.float32)

    @pl.when(k == pl.num_programs(2) - 1)
    def _():
        xm = feat_m_ref[0]                               # (TM, Fin_p) bf16
        ax = ax_acc_ref[...].astype(jnp.bfloat16)        # (TM, Fin_p) bf16
        lhs = jnp.concatenate([xm, ax], axis=-1)         # (TM, 2*Fin_p)
        # Single fused matmul: x @ W1 + (adj @ x) @ W
        v = (jnp.dot(lhs, w_ref[...], preferred_element_type=jnp.float32)
             + bias_ref[...])                            # f32 elementwise
        # TODO(synk): dropout(p=0.5) is identity here (inference mode);
        # training-mode dropout would need pltpu.prng_seed / prng_random_bits.
        out_ref[0] = jnp.maximum(v, 0.0).astype(out_ref.dtype)


def _pick_tile(n, target, align):
    """Largest divisor of n that is <= target and a multiple of `align`,
    falling back to the full extent (always a legal block)."""
    if n <= target:
        return n
    d = target - (target % align)
    while d >= align:
        if n % d == 0:
            return d
        d -= align
    return n  # TODO(synk): masked tail tiles would avoid pulling the full dim.


def gcn_forward(feature, adj, w1, w, bias, *, tm=1024, tk=2048):
    """feature: (B, N, Fin), adj: (B, N, N), w1/w: (Fin, Fout), bias: (Fout,)."""
    B, N, Fin = feature.shape
    Fout = w1.shape[1]

    # Lane-dense padding of both feature dims (zero rows/cols, exact math).
    Fout_p = max(128, ((Fout + 127) // 128) * 128)
    Fin_p = max(128, ((Fin + 127) // 128) * 128)
    pad_out = Fout_p - Fout
    pad_in = Fin_p - Fin

    feat_b = jnp.pad(feature, ((0, 0), (0, 0), (0, pad_in))).astype(jnp.bfloat16)
    adj_b = adj.astype(jnp.bfloat16)
    w1_p = jnp.pad(w1, ((0, pad_in), (0, pad_out)))
    w_p = jnp.pad(w, ((0, pad_in), (0, pad_out)))
    # Stacked weight: rows [0, Fin_p) = W1, rows [Fin_p, 2*Fin_p) = W, matching
    # the [x | adj@x] concat order in the kernel epilogue.
    w_stack = jnp.concatenate([w1_p, w_p], axis=0).astype(jnp.bfloat16)
    bias_p = jnp.pad(bias, (0, pad_out)).reshape(1, Fout_p).astype(jnp.float32)

    # Tile selection: divisors of N, 16-aligned rows (bf16 sublane pairs),
    # 128-aligned K lanes, or the full extent for small graphs.
    TM = _pick_tile(N, tm, 16)
    TK = _pick_tile(N, tk, 128)
    # Keep at least 2 parallel programs for v7x's two TensorCores when we can.
    if B * (N // TM) < 2:
        for cand in (TM // 2, TM // 4):
            if cand >= 16 and cand % 16 == 0 and N % cand == 0:
                TM = cand
                break
    assert N % TM == 0 and N % TK == 0

    grid = (B, N // TM, N // TK)
    n_m = N // TM

    # VMEM budget: tile working set (double-buffered pipeline blocks) + headroom,
    # capped at 48 MiB so the config also fits v7x's 64 MiB per-core VMEM.
    working_set = (
        2 * TM * TK * 2            # adj tile (bf16, double buffered)
        + 2 * TM * Fin_p * 2       # feat_m
        + 2 * TK * Fin_p * 2       # feat_k
        + 2 * 2 * Fin_p * Fout_p * 2   # stacked weights
        + 2 * Fout_p * 4           # bias
        + 2 * TM * Fout_p * 4      # output tile (f32)
        + TM * Fin_p * 4           # accumulator scratch
    )
    vmem_limit = min(max(int(working_set * 1.3) + (8 << 20), 32 << 20), 48 << 20)

    cost = pl.CostEstimate(
        flops=2 * B * N * N * Fin_p + 2 * B * N * (2 * Fin_p) * Fout_p,
        transcendentals=0,
        bytes_accessed=(B * N * N * 2                  # adj (bf16)
                        + B * N * Fin_p * 2            # feat_m (once per row tile)
                        + B * n_m * N * Fin_p * 2      # feat_k (per (m,k) step)
                        + 2 * Fin_p * Fout_p * 2       # stacked weights
                        + Fout_p * 4                   # bias
                        + B * N * Fout_p * 4),         # f32 output
    )

    out = pl.pallas_call(
        gcn_kernel,
        out_shape=jax.ShapeDtypeStruct((B, N, Fout_p), jnp.float32),
        grid_spec=pltpu.PrefetchScalarGridSpec(
            num_scalar_prefetch=0,
            grid=grid,
            in_specs=[
                pl.BlockSpec((1, TM, Fin_p), lambda b, m, k: (b, m, 0)),   # x rows
                pl.BlockSpec((1, TK, Fin_p), lambda b, m, k: (b, k, 0)),   # x k-slab
                pl.BlockSpec((1, TM, TK), lambda b, m, k: (b, m, k)),      # adj tile
                pl.BlockSpec((2 * Fin_p, Fout_p), lambda b, m, k: (0, 0)), # [W1;W]
                pl.BlockSpec((1, Fout_p), lambda b, m, k: (0, 0)),         # bias
            ],
            out_specs=pl.BlockSpec((1, TM, Fout_p), lambda b, m, k: (b, m, 0)),
            scratch_shapes=[pltpu.VMEM((TM, Fin_p), jnp.float32)],
        ),
        compiler_params=pltpu.CompilerParams(
            dimension_semantics=("parallel", "parallel", "arbitrary"),
            vmem_limit_bytes=vmem_limit),
        cost_estimate=cost,
    )(feat_b, feat_b, adj_b, w_stack, bias_p)

    # Slice off lane padding only when it exists (avoids an extra output pass
    # whenever Fout is already a multiple of 128).
    if pad_out == 0:
        return out
    return out[..., :Fout]


def xavier_uniform(key, fan_in, fan_out, dtype=jnp.float32):
    # matches torch.nn.init.xavier_uniform_ (gain=1)
    limit = (6.0 / (fan_in + fan_out)) ** 0.5
    # stored as (Fin, Fout) so the kernel computes x @ W (== Linear's x @ W^T)
    return jax.random.uniform(key, (fan_in, fan_out), dtype,
                              minval=-limit, maxval=limit)


if __name__ == "__main__":
    B, N, Fin, Fout = 2, 16, 8, 32

    key = jax.random.PRNGKey(0)
    k_feat, k_adj, k_w1, k_w = jax.random.split(key, 4)

    feature = jax.random.normal(k_feat, (B, N, Fin), jnp.float32)
    adj = jax.random.uniform(k_adj, (B, N, N), jnp.float32)
    # row-normalize adj (typical GCN usage; any dense adj works)
    adj = adj / jnp.sum(adj, axis=-1, keepdims=True)

    w1 = xavier_uniform(k_w1, Fin, Fout)   # self.w1
    w = xavier_uniform(k_w, Fin, Fout)     # self.w
    bias = jnp.zeros((Fout,), jnp.float32)

    out = gcn_forward(feature, adj, w1, w, bias)
    out = jax.block_until_ready(out)

    # pure-JAX f32 reference; kernel uses bf16 MXU operands, so tolerance is
    # relaxed to bf16-level accuracy.
    ref = jnp.maximum(feature @ w1 + (adj @ feature) @ w + bias, 0.0)
    assert out.shape == (B, N, Fout)
    assert jnp.allclose(out, ref, atol=3e-2, rtol=3e-2)

    print("KERNEL_OK")
</pallas_src>

<mosaic_0001>
module attributes {stable_mosaic.version = 11 : i64} {
  func.func @gcn_kernel(%arg0: i32, %arg1: i32, %arg2: i32, %arg3: memref<1x16x128xbf16, #tpu.memory_space<vmem>>, %arg4: memref<1x16x128xbf16, #tpu.memory_space<vmem>>, %arg5: memref<1x16x16xbf16, #tpu.memory_space<vmem>>, %arg6: memref<256x128xbf16, #tpu.memory_space<vmem>>, %arg7: memref<1x128xf32, #tpu.memory_space<vmem>>, %arg8: memref<1x16x128xf32, #tpu.memory_space<vmem>>, %arg9: memref<16x128xf32, #tpu.memory_space<vmem>>) attributes {dimension_semantics = [#tpu.dimension_semantics<parallel>, #tpu.dimension_semantics<parallel>, #tpu.dimension_semantics<arbitrary>], iteration_bounds = array<i64: 2, 1, 1>, scalar_prefetch = 0 : i64, scratch_operands = 1 : i64, tpu.core_type = #tpu.core_type<tc>, window_params = [{transform_indices = @transform_0, window_bounds = array<i64: 1, 16, 128>}, {transform_indices = @transform_1, window_bounds = array<i64: 1, 16, 128>}, {transform_indices = @transform_2, window_bounds = array<i64: 1, 16, 16>}, {pipeline_mode = #tpu.pipeline_mode<synchronous>, transform_indices = @transform_3, window_bounds = array<i64: 256, 128>}, {pipeline_mode = #tpu.pipeline_mode<synchronous>, transform_indices = @transform_4, window_bounds = array<i64: 1, 128>}, {transform_indices = @transform_5, window_bounds = array<i64: 1, 16, 128>}]} {
    %c0_i32 = arith.constant 0 : i32
    %0 = arith.cmpi eq, %arg2, %c0_i32 : i32
    %1 = arith.extui %0 : i1 to i32
    %c0_i32_0 = arith.constant 0 : i32
    %2 = arith.cmpi ne, %1, %c0_i32_0 : i32
    scf.if %2 {
      %cst_12 = arith.constant 0.000000e+00 : f32
      %14 = vector.broadcast %cst_12 : f32 to vector<16x128xf32>
      %c0_13 = arith.constant 0 : index
      %c0_14 = arith.constant 0 : index
      %15 = vector.load %arg9[%c0_13, %c0_14] : memref<16x128xf32, #tpu.memory_space<vmem>>, vector<16x128xf32>
      tpu.vector_store %arg9[%c0_13, %c0_14], %14 {strides = array<i32>} : memref<16x128xf32, #tpu.memory_space<vmem>>, vector<16x128xf32>,
    } else {
    }
    %c0 = arith.constant 0 : index
    %c0_1 = arith.constant 0 : index
    %3 = vector.load %arg9[%c0, %c0_1] : memref<16x128xf32, #tpu.memory_space<vmem>>, vector<16x128xf32>
    %c0_2 = arith.constant 0 : index
    %c0_3 = arith.constant 0 : index
    %c0_4 = arith.constant 0 : index
    %4 = vector.load %arg5[%c0_2, %c0_3, %c0_4] : memref<1x16x16xbf16, #tpu.memory_space<vmem>>, vector<1x16x16xbf16>
    %5 = vector.shape_cast %4 : vector<1x16x16xbf16> to vector<16x16xbf16>
    %c0_5 = arith.constant 0 : index
    %c0_6 = arith.constant 0 : index
    %c0_7 = arith.constant 0 : index
    %6 = vector.load %arg4[%c0_5, %c0_6, %c0_7] : memref<1x16x128xbf16, #tpu.memory_space<vmem>>, vector<1x16x128xbf16>
    %7 = vector.shape_cast %6 : vector<1x16x128xbf16> to vector<16x128xbf16>
    %cst = arith.constant dense<0.000000e+00> : vector<16x128xf32>
    %8 = tpu.matmul %5, %7, %cst {dimension_numbers = #tpu.dot_dimension_numbers<[1], [0], [0], [1], [0, 0, 1, 1], [], []>} : vector<16x16xbf16>, vector<16x128xbf16>, vector<16x128xf32> -> vector<16x128xf32>
    %9 = arith.addf %3, %8 : vector<16x128xf32>
    %c0_8 = arith.constant 0 : index
    %c0_9 = arith.constant 0 : index
    %10 = vector.load %arg9[%c0_8, %c0_9] : memref<16x128xf32, #tpu.memory_space<vmem>>, vector<16x128xf32>
    tpu.vector_store %arg9[%c0_8, %c0_9], %9 {strides = array<i32>} : memref<16x128xf32, #tpu.memory_space<vmem>>, vector<16x128xf32>,
    %c0_i32_10 = arith.constant 0 : i32
    %11 = arith.cmpi eq, %arg2, %c0_i32_10 : i32
    %12 = arith.extui %11 : i1 to i32
    %c0_i32_11 = arith.constant 0 : i32
    %13 = arith.cmpi ne, %12, %c0_i32_11 : i32
    scf.if %13 {
      %c0_12 = arith.constant 0 : index
      %c0_13 = arith.constant 0 : index
      %c0_14 = arith.constant 0 : index
      %14 = vector.load %arg3[%c0_12, %c0_13, %c0_14] : memref<1x16x128xbf16, #tpu.memory_space<vmem>>, vector<1x16x128xbf16>
      %15 = vector.shape_cast %14 : vector<1x16x128xbf16> to vector<16x128xbf16>
      %c0_15 = arith.constant 0 : index
      %c0_16 = arith.constant 0 : index
      %16 = vector.load %arg9[%c0_15, %c0_16] : memref<16x128xf32, #tpu.memory_space<vmem>>, vector<16x128xf32>
      %17 = arith.truncf %16 : vector<16x128xf32> to vector<16x128xbf16>
      %18 = tpu.concatenate %15, %17 in 1 : vector<16x128xbf16>, vector<16x128xbf16> -> vector<16x256xbf16>
      %c0_17 = arith.constant 0 : index
      %c0_18 = arith.constant 0 : index
      %19 = vector.load %arg6[%c0_17, %c0_18] : memref<256x128xbf16, #tpu.memory_space<vmem>>, vector<256x128xbf16>
      %cst_19 = arith.constant dense<0.000000e+00> : vector<16x128xf32>
      %20 = tpu.matmul %18, %19, %cst_19 {dimension_numbers = #tpu.dot_dimension_numbers<[1], [0], [0], [1], [0, 0, 1, 1], [], []>} : vector<16x256xbf16>, vector<256x128xbf16>, vector<16x128xf32> -> vector<16x128xf32>
      %c0_20 = arith.constant 0 : index
      %c0_21 = arith.constant 0 : index
      %21 = vector.load %arg7[%c0_20, %c0_21] : memref<1x128xf32, #tpu.memory_space<vmem>>, vector<1x128xf32>
      %22 = vector.broadcast %21 : vector<1x128xf32> to vector<16x128xf32>
      %23 = arith.addf %20, %22 : vector<16x128xf32>
      %cst_22 = arith.constant 0.000000e+00 : f32
      %24 = vector.broadcast %cst_22 : f32 to vector<16x128xf32>
      %25 = arith.maximumf %23, %24 : vector<16x128xf32>
      %c0_23 = arith.constant 0 : index
      %c0_24 = arith.constant 0 : index
      %c0_25 = arith.constant 0 : index
      %26 = vector.load %arg8[%c0_23, %c0_24, %c0_25] : memref<1x16x128xf32, #tpu.memory_space<vmem>>, vector<1x16x128xf32>
      %27 = vector.shape_cast %26 : vector<1x16x128xf32> to vector<16x128xf32>
      %28 = vector.shape_cast %25 : vector<16x128xf32> to vector<1x16x128xf32>
      tpu.vector_store %arg8[%c0_23, %c0_24, %c0_25], %28 {strides = array<i32>} : memref<1x16x128xf32, #tpu.memory_space<vmem>>, vector<1x16x128xf32>,
    } else {
    }
    return
  }
  func.func @transform_0(%arg0: i32, %arg1: i32, %arg2: i32) -> (i32, i32, i32) {
    %c0_i32 = arith.constant 0 : i32
    %c0_i32_0 = arith.constant 0 : i32
    return %arg0, %arg1, %c0_i32 : i32, i32, i32
  }
  func.func @transform_1(%arg0: i32, %arg1: i32, %arg2: i32) -> (i32, i32, i32) {
    %c0_i32 = arith.constant 0 : i32
    %c0_i32_0 = arith.constant 0 : i32
    return %arg0, %arg2, %c0_i32 : i32, i32, i32
  }
  func.func @transform_2(%arg0: i32, %arg1: i32, %arg2: i32) -> (i32, i32, i32) {
    %c0_i32 = arith.constant 0 : i32
    return %arg0, %arg1, %arg2 : i32, i32, i32
  }
  func.func @transform_3(%arg0: i32, %arg1: i32, %arg2: i32) -> (i32, i32) {
    %c0_i32 = arith.constant 0 : i32
    %c0_i32_0 = arith.constant 0 : i32
    %c0_i32_1 = arith.constant 0 : i32
    return %c0_i32, %c0_i32_0 : i32, i32
  }
  func.func @transform_4(%arg0: i32, %arg1: i32, %arg2: i32) -> (i32, i32) {
    %c0_i32 = arith.constant 0 : i32
    %c0_i32_0 = arith.constant 0 : i32
    %c0_i32_1 = arith.constant 0 : i32
    return %c0_i32, %c0_i32_0 : i32, i32
  }
  func.func @transform_5(%arg0: i32, %arg1: i32, %arg2: i32) -> (i32, i32, i32) {
    %c0_i32 = arith.constant 0 : i32
    %c0_i32_0 = arith.constant 0 : i32
    return %arg0, %arg1, %c0_i32 : i32, i32, i32
  }
}

</mosaic_0001>

<bundles_post_ra>
// kernel: tpu_custom_call.1
= control target key start
LH: loop header
LB: loop body
LE: loop exit
PB: predicated region body
PF: predicated region fallthrough
CT: control target
= control target key end

     0   :  { %s1485_s0 = inlined_call_operand.hbm [shape: bf16[2,16,128], index: 0, kind: input, shape index: {}]   ;;  %s1486_s1 = inlined_call_operand.hbm [shape: bf16[2,16,128], index: 1, kind: input, shape index: {}]   ;;  %s1487_s2 = inlined_call_operand.hbm [shape: bf16[2,16,16], index: 2, kind: input, shape index: {}]   ;;  %s1488_s3 = inlined_call_operand.hbm [shape: bf16[256,128], index: 3, kind: input, shape index: {}]   ;;  %s1489_s4 = inlined_call_operand.vmem [shape: f32[1,128], index: 4, kind: input, shape index: {}]   ;;  %s1490_s5 = inlined_call_operand.hbm [shape: f32[2,16,128], index: 5, kind: output, shape index: {}]  }
   0x1   :  { %1500 = sst [smem:[#allocation19_spill]] %s1485_s0 }
   0x2   :  { %1501 = sst [smem:[#allocation20_spill]] %s1486_s1 }
   0x3   :  { %10 = vsyncpa [#allocation4], 0 }
   0x4   :  { %12 = vsyncpa [#allocation4 + $0x1], 0 }
   0x5   :  { %13 = vsyncpa [#allocation7], 0 }
   0x6   :  { %15 = vsyncpa [#allocation7 + $0x1], 0 }
   0x7   :  { %16 = vsyncpa [#allocation10], 0 }
   0x8   :  { %17 = vsyncpa [#allocation5], 0 }
   0x9   :  { %19 = vsyncpa [#allocation5 + $0x1], 0  ;;  %s1237_s18 = smov 0   ;;  %s1239_s19 = smov 0  }
   0xa   :  { %s1241_s20 = smov 0   ;;  %s1243_s21 = smov 0  }
   0xb   :  { %s1245_s22 = smov 0   ;;  %s1247_s23 = smov 0  }
   0xc LB: > { %1502 = sst [smem:[#allocation16_spill]] %s1190_s22  ;;  %s44_s24 = sadd.s32 1, %s1190_s22  ;;  %s1194_s23 = sphi %s1247_s23, %s25_s23   ;;  %s1190_s22 = sphi %s1245_s22, %s1523_s22   ;;  %s1186_s21 = sphi %s1243_s21, %s1522_s21   ;;  %s1182_s20 = sphi %s1241_s20, %s1526_s20   ;;  %s1178_s19 = sphi %s1239_s19, %s1525_s19   ;;  %s1174_s18 = sphi %s1237_s18, %s1524_s18  }
   0xd   : > { %s53_s25 = sadd.s32 1, %s1182_s20  ;;  %p46_p0 = scmp.ge.s32.totalorder %s44_s24, 2 }
   0xe   : > { %p60_p1 = scmp.ne.s32.totalorder %s1182_s20, %s1178_s19  ;;  %p61_p2 = scmp.eq.s32.totalorder %s1194_s23, 0 }
   0xf   : > { %s1528_s24 = smov (%p46_p0, %s44_s24), 0  ;;  %p919_p6 = scmp.lt.s32.totalorder %s1194_s23, 2 }
  0x10   : > { %1503 = sst [smem:[#allocation17_spill]] %s1528_s24  ;;  %p62_p3 = por %p61_p2, %p60_p1 }
  0x11   : > { %s48_s26 = ssub.s32 %s1190_s22, %s1528_s24  ;;  %s1495_s27 = sand.u32 1, %s1182_s20  }
  0x12   : > { %p51_p5 = scmp.eq.s32.totalorder %s48_s26, 0  ;;  %s1283_s28 = sshll.u32 %s1190_s22, 7 }
  0x13   : > { %s1290_s30 = sshll.u32 %s1495_s27, 3  ;;  %p1292_p7 = pnand %p919_p6, %p62_p3 }
  0x14   : > { %s1286_s29 = scalar_select %p51_p5, %s1182_s20, %s53_s25  }
  0x15   : > { %s257_s7 = sand.u32 1, %s1194_s23   ;;  %s1506_s1 = sld [smem:[#allocation20_spill]] }
  0x16   : > { %1504 = sst [smem:[#allocation18_spill]] %s1286_s29  ;;  %s261_s11 = scalar_lea.vmem [#allocation6], %s1290_s30 }
  0x17   : > { %s270_s12 = sshll.u32 %s261_s11, 4  ;;  %s1302_s13 = scalar_lea.sflag [#allocation7], %s257_s7  ;;  %s271_s12 = int_to_ptr.vmem [resolvable:$true] %s270_s12 }
  0x18   : > { %p1499_p8 = pneg %p1292_p7  ;;  %s1009_s14 = scalar_lea.vmem %s271_s12, 128 }
  0x19   : > { %p1010_p9 = scmp.ne.s32.totalorder %s271_s12, %s1009_s14  ;;  %s1196_s15 = smov [#allocation6]  }
  0x1a   : > { %s1014_s16 = sshll.u32 %s1196_s15, 4  ;;  %s1015_s16 = int_to_ptr.vmem [resolvable:$false] %s1014_s16 }
  0x1b   : > { %s269_s10 = scalar_lea.hbm %s1506_s1, %s1283_s28  ;;  %p1012_p10 = pnand %p1010_p9, %p1499_p8 }
  0x1c   : > { %s1016_s17 = scalar_lea.vmem %s1015_s16, 256  ;;  %p1017_p12 = scmp.lt.s32.totalorder %s271_s12, %s1015_s16 }
  0x1d   : > { %p1013_p11 = pneg %p1012_p10  ;;  %p1018_p13 = scmp.lt.s32.totalorder %s1016_s17, %s1009_s14 }
  0x1f   : > { %p1019_p0 = por %p1018_p13, %p1017_p12 }
  0x21   : > { %p1020_p2 = pnand %p1019_p0, %p1013_p11 }
  0x23   : > { %1023 = shalt.err (!%p1020_p2)
}
  0x24   : > { %s1491_s25 = smov 64   ;;  %s1493_s26 = smov 4  }
  0x25   : > { %910 = dma.hbm_to_vmem [thread:$0]  (!%p1292_p7), %s269_s10, 128, %s271_s12, %s1302_s13, %s1491_s25, %s1491_s25, %s1493_s26  }
  0x26   : > { %s1316_s7 = sadd.s32 4294967295, %s1194_s23   ;;  %s809_s8 = sadd.s32 4294967294, %s1194_s23  }
  0x27   : > { %p66_p3 = scmp.ne.s32.totalorder %s1178_s19, %s1174_s18  ;;  %p1498_p5 = scmp.eq.s32.totalorder %s1316_s7, 0 }
  0x28   : > { %p192_p6 = scmp.eq.s32.totalorder %s1316_s7, 1  ;;  %p198_p9 = scmp.eq.s32.totalorder %s809_s8, 1 }
  0x29   : > { %p810_p10 = scmp.ge.s32.totalorder %s1194_s23, 1  ;;  %p1326_p11 = por %p1498_p5, %p66_p3 }
  0x2a   : > { %p1333_p12 = por %p192_p6, %p60_p1  ;;  %p1337_p13 = por %p198_p9, %p66_p3 }
  0x2b   : > { %p205_p0 = scmp.lt.s32.totalorder %s1194_s23, 3  ;;  %s1199_s14 = smov [#allocation9]  }
  0x2c   : > { %s1509_s11 = scalar_select %p1337_p13, 1, 0 }
  0x2d   : > { %p1342_p2 = pnand %p810_p10, %p205_p0  ;;  %s217_s15 = sshll.u32 %s1199_s14, 4  ;;  %s1346_s15 = int_to_ptr.vmem [resolvable:$true] %s217_s15 }
  0x2e   : > { %s1511_s0 = sld [smem:[#allocation19_spill]]  ;;  %s238_s25 = scalar_lea.vmem [#allocation3], %s1290_s30 }
  0x2f   : > { %p900_p1 = pneg %p1342_p2  ;;  %s247_s26 = sshll.u32 %s238_s25, 4  ;;  %s248_s26 = int_to_ptr.vmem [resolvable:$true] %s247_s26 }
  0x30   : > { %s1513_s1 = sand.u32 1, %s1182_s20   ;;  %s1037_s22 = scalar_lea.vmem %s248_s26, 128 }
  0x31   : > { %p1357_p3 = pnand %p900_p1, %p1498_p5  ;;  %s235_s24 = scalar_lea.sflag [#allocation4], %s1513_s1 }
  0x32   : > { %p1038_p6 = scmp.ne.s32.totalorder %s248_s26, %s1037_s22  ;;  %s1200_s14 = smov [#allocation3]  }
  0x33   : > { %s1042_s29 = sshll.u32 %s1200_s14, 4  ;;  %s1043_s29 = int_to_ptr.vmem [resolvable:$false] %s1042_s29 }
  0x34   : > { %s246_s8 = scalar_lea.hbm %s1511_s0, %s1283_s28  ;;  %p1040_p9 = pnand %p1038_p6, %p1499_p8 }
  0x35   : > { %s1044_s16 = scalar_lea.vmem %s1043_s29, 256  ;;  %p1045_p0 = scmp.lt.s32.totalorder %s248_s26, %s1043_s29 }
  0x36   : > { %p1041_p10 = pneg %p1040_p9  ;;  %p1046_p4 = scmp.lt.s32.totalorder %s1044_s16, %s1037_s22 }
  0x38   : > { %p1047_p13 = por %p1046_p4, %p1045_p0 }
  0x3a   : > { %p1048_p1 = pnand %p1047_p13, %p1041_p10 }
  0x3c   : > { %1051 = shalt.err (!%p1048_p1)
}
  0x3d   : > { %s1514_s25 = smov 4   ;;  %s1515_s17 = smov 64  }
  0x3e   : > { %907 = dma.hbm_to_vmem [thread:$0]  (!%p1292_p7), %s246_s8, 128, %s248_s26, %s235_s24, %s1515_s17, %s1515_s17, %s1514_s25  }
  0x3f   : > { %p1054_p6 = pneg %p1357_p3  ;;  %s1063_s1 = scalar_lea.vmem %s1346_s15, 2048 }
  0x40   : > { %p1064_p9 = scmp.ne.s32.totalorder %s1346_s15, %s1063_s1  ;;  %p1071_p4 = scmp.lt.s32.totalorder %s1346_s15, %s1346_s15 }
  0x41   : > { %p1072_p13 = scmp.lt.s32.totalorder %s1063_s1, %s1063_s1 }
  0x42   : > { %p1066_p5 = pnand %p1064_p9, %p1054_p6 }
  0x43   : > { %p1073_p10 = por %p1072_p13, %p1071_p4 }
  0x44   : > { %p1067_p8 = pneg %p1066_p5 }
  0x46   : > { %p1074_p0 = pnand %p1073_p10, %p1067_p8 }
  0x48   : > { %1077 = shalt.err (!%p1074_p0)
}
  0x49   : > { %903 = dma.hbm_to_vmem [thread:$0]  (!%p1357_p3), %s1488_s3, 2048, %s1346_s15, [#allocation10], %s1515_s17, %s1515_s17, %s1514_s25  }
  0x4a   : > { %s293_s8 = scalar_lea.hbm %s1487_s2, %s1283_s28  ;;  %s284_s14 = scalar_lea.vmem [#allocation8], %s1290_s30 }
  0x4b   : > { %s294_s16 = sshll.u32 %s284_s14, 4  ;;  %p1516_p5 = pneg %p1292_p7  ;;  %s295_s16 = int_to_ptr.vmem [resolvable:$true] %s294_s16 }
  0x4c   : > { %s1091_s1 = scalar_lea.vmem %s295_s16, 128  ;;  %s1201_s27 = smov [#allocation8]  }
  0x4d   : > { %p1092_p8 = scmp.ne.s32.totalorder %s295_s16, %s1091_s1  ;;  %s1096_s0 = sshll.u32 %s1201_s27, 4  ;;  %s1097_s0 = int_to_ptr.vmem [resolvable:$false] %s1096_s0 }
  0x4e   : > { %s1098_s22 = scalar_lea.vmem %s1097_s0, 256  ;;  %p1099_p9 = scmp.lt.s32.totalorder %s295_s16, %s1097_s0 }
  0x4f   : > { %p1094_p1 = pnand %p1092_p8, %p1516_p5  ;;  %p1100_p4 = scmp.lt.s32.totalorder %s1098_s22, %s1091_s1 }
  0x51   : > { %p1095_p6 = pneg %p1094_p1  ;;  %p1101_p3 = por %p1100_p4, %p1099_p9 }
  0x53   : > { %p1102_p13 = pnand %p1101_p3, %p1095_p6 }
  0x55   : > { %1105 = shalt.err (!%p1102_p13)
}
  0x56   : > { %913 = dma.hbm_to_vmem [thread:$0]  (!%p1292_p7), %s293_s8, 128, %s295_s16, %s1302_s13, %s1515_s17, %s1515_s17, %s1514_s25  }
  0x57   : > { %306 = sbr.rel (%p1342_p2) target bundleno = 523 (0x20b), region = 40  ;;  %s1403_s28 = sand.u32 (!%p1342_p2), 1, %s1178_s19  }
  0x58   : > { %s1406_s0 = sshll.u32 (!%p1342_p2), %s1403_s28, 3  ;;  %s309_s30 = scalar_lea.sflag (!%p1342_p2), [#allocation4], %s1403_s28 }
  0x59   : > { %s312_s15 = scalar_lea.vmem (!%p1342_p2), [#allocation3], %s1406_s0 }
  0x5c   : > { %1157 = dma.done.wait (%p1326_p11), %s309_s30, 128  }
  0x5d   : > { %1159 = vsyncadd (%p1326_p11), %s309_s30, 4294967168  ;;  %s317_s6 = sand.u32 1, %s1316_s7   ;;  %s321_s12 = scalar_lea.vmem [#allocation6], %s1406_s0 }
  0x5e   : > { %s318_s13 = scalar_lea.sflag [#allocation7], %s317_s6 }
  0x5f   : > { %1161 = dma.done.wait (%p1326_p11), %s318_s13, 256  }
  0x60   : > { %1163 = vsyncadd (%p1326_p11), %s318_s13, 4294967040  ;;  %s330_s25 = scalar_lea.vmem [#allocation8], %s1406_s0  ;;  %p1517_p7 = scmp.eq.s32.totalorder %s1316_s7, 0 }
  0x62   : > { %1165 = dma.done.wait (%p1517_p7), [#allocation10], 2048   ;;  %p1518_p2 = pmov %p1517_p7 }
  0x63   : > { %v1202_v0 = vmov 0.0   ;;  %vm1203_vm0 = vmmov 0   ;;  %v977_v1 = vld [vmem:[%s321_s12] sm:$0xff]   ;;  %v978_v2 = vld [vmem:[%s330_s25] sm:$0xff]   ;;  %vm399_vm1 = vcmask 130048   ;;  %s827_s7 = sshll.u32 %s1403_s28, 4 }
  0x64   : > { %1167 = vsyncadd (%p1518_p2), [#allocation10], 4294965248  ;;  %882 = vmatprep.subr.bf16.mxu0 %v1202_v0  ;;  %884 = vmatprep.mubr.msk.bf16.mxu0 %vm1203_vm0, %v1202_v0  ;;  %v979_v3 = vld [vmem:[#allocation9 + $0x78] sm:$0xff]   ;;  %v981_v5 = vld [vmem:[#allocation9 + $0x70] sm:$0xff]   ;;  %s370_s24 = scalar_lea.vmem [#allocation11], %s827_s7  ;;  %s857_s26 = sshll.u32 %s1186_s21, 8 }
  0x65   : > { %883 = vmatpush3.bf16.msra.mxu0 %v977_v1  ;;  %v980_v4 = vld [vmem:[#allocation9 + $0x38] sm:$0xff]   ;;  %860 = vmatprep.subr.bf16.mxu1 %v979_v3  ;;  %v982_v6 = vld [vmem:[#allocation9 + $0x30] sm:$0xff]   ;;  %v983_v7 = vld [vmem:[#allocation9 + $0x68] sm:$0xff]   ;;  %s658_s29 = sshll.u32 %s370_s24, 4  ;;  %s1437_s16 = scalar_lea.hbm %s1490_s5, %s857_s26  ;;  %s1432_s29 = int_to_ptr.vmem [resolvable:$true] %s658_s29 }
  0x66   : > { %861 = vmatpush3.bf16.msra.mxu1 %v980_v4  ;;  %v984_v8 = vld [vmem:[#allocation9 + $0x28] sm:$0xff]   ;;  %v985_v9 = vld [vmem:[#allocation9 + $0x60] sm:$0xff]   ;;  %v987_v11 = vld [vmem:[#allocation9 + $0x58] sm:$0xff]   ;;  %s643_s1 = scalar_lea.sflag [#allocation5], %s1403_s28  ;;  %s1106_s27 = scalar_lea.vmem %s1432_s29, 256 }
  0x67   : > { %862 = vmatprep.subr.bf16.mxu1 %v981_v5  ;;  %v986_v10 = vld [vmem:[#allocation9 + $0x20] sm:$0xff]   ;;  %v988_v12 = vld [vmem:[#allocation9 + $0x18] sm:$0xff]   ;;  %v989_v13 = vld [vmem:[#allocation9 + $0x50] sm:$0xff]   ;;  %p1107_p11 = scmp.ne.s32.totalorder %s1432_s29, %s1106_s27  ;;  %s1204_s21 = smov [#allocation11]  }
  0x68   : > { %885 = vmatmul.mubr.msk.bf16.vlgmr.msra.gmra.mxu0 %vm399_vm1, %v978_v2  ;;  %v990_v14 = vld [vmem:[#allocation9 + $0x10] sm:$0xff]   ;;  %v991_v15 = vld [vmem:[#allocation9 + $0x48] sm:$0xff]   ;;  %v993_v17 = vld [vmem:[#allocation9 + $0x40] sm:$0xff]   ;;  %s1110_s22 = sshll.u32 %s1204_s21, 4  ;;  %s1111_s22 = int_to_ptr.vmem [resolvable:$false] %s1110_s22 }
  0x69   : > { %v992_v16 = vld [vmem:[#allocation9 + $0x8] sm:$0xff]   ;;  %v994_v18 = vld [vmem:[#allocation9] sm:$0xff]   ;;  %v995_v22 = vld [vmem:[%s312_s15] sm:$0xff]   ;;  %p1108_p10 = pnand %p1107_p11, %p1333_p12  ;;  %s1112_s0 = scalar_lea.vmem %s1111_s22, 512 }
  0x6a   : > { %863 = vmatpush3.bf16.msra.mxu1 %v982_v6  ;;  %v832_v26 = vld [vmem:[%s1489_s4] ss:$0 sm:$0xff]  ;;  %p1113_p8 = scmp.lt.s32.totalorder %s1432_s29, %s1111_s22  ;;  %p1114_p5 = scmp.lt.s32.totalorder %s1112_s0, %s1106_s27 }
  0x6b   : > { %864 = vmatprep.subr.bf16.mxu1 %v983_v7  ;;  %p1109_p0 = pneg %p1108_p10 }
  0x6c   : > { %p1115_p1 = por %p1114_p5, %p1113_p8 }
  0x6e   : > { %865 = vmatpush3.bf16.msra.mxu1 %v984_v8  ;;  %p1116_p6 = pnand %p1115_p1, %p1109_p0 }
  0x6f   : > { %866 = vmatprep.subr.bf16.mxu1 %v985_v9 }
  0x72   : > { %867 = vmatpush3.bf16.msra.mxu1 %v986_v10 }
  0x73   : > { %868 = vmatprep.subr.bf16.mxu1 %v987_v11 }
  0x76   : > { %869 = vmatpush3.bf16.msra.mxu1 %v988_v12 }
  0x77   : > { %870 = vmatprep.subr.bf16.mxu1 %v989_v13 }
  0x7a   : > { %871 = vmatpush3.bf16.msra.mxu1 %v990_v14 }
  0x7b   : > { %872 = vmatprep.subr.bf16.mxu1 %v991_v15 }
  0x7e   : > { %873 = vmatpush3.bf16.msra.mxu1 %v992_v16 }
  0x7f   : > { %874 = vmatprep.subr.bf16.mxu1 %v993_v17 }
  0x82   : > { %875 = vmatpush3.bf16.msra.mxu1 %v994_v18 }
 0x128   : > { %v437_v19 = vpop.f32.mrf.mxu0 }
 0x12a   : > { %v886_v20 = vpop.f32.mrf.mxu0 }
 0x12c   : > { %v440_v21 = vpop.f32.mrf.mxu0 }
 0x12d   : > { %v455_v23 = vpack.c.bf16 %v440_v21, %v437_v19 }
 0x12e   : > { %v887_v24 = vpop.f32.mrf.mxu0 }
 0x12f   : > { %629 = vmatprep.mubr.bf16.mxu1 %v455_v23 }
 0x130   : > { %630 = vmatmul.mubr.bf16.vlgmr.msra.gmra.mxu1 %v995_v22 }
 0x1f0   : > { %v876_v25 = vpop.f32.mrf.mxu1 }
 0x1f2   : > { %v877_v27 = vpop.f32.mrf.mxu1 }
 0x1f3   : > { %v878_v28 = vadd.f32 %v877_v27, %v876_v25 }
 0x1f4   : > { %v879_v29 = vpop.f32.mrf.mxu1 }
 0x1f5   : > { %v632_v30 = vadd.f32 %v878_v28, %v832_v26 }
 0x1f6   : > { %v880_v31 = vpop.f32.mrf.mxu1 }
 0x1f7   : > { %v638_v32 = vmax.f32 %v632_v30, 0.0  ;;  %v881_v33 = vadd.f32 %v880_v31, %v879_v29 }
 0x1f9   : > { %640 = vst [vmem:[%s370_s24] sm:$0xff] %v638_v32  ;;  %v635_v34 = vadd.f32 %v881_v33, %v832_v26 }
 0x1fb   : > { %v639_v35 = vmax.f32 %v635_v34, 0.0 }
 0x1fd   : > { %641 = vst [vmem:[%s370_s24 + $0x8] sm:$0xff] %v639_v35 }
 0x1fe   : > { %1119 = shalt.err (!%p1116_p6)
}
 0x1ff   : > { %s1120_s30 = scalar_lea.hbm %s1437_s16, 256  ;;  %s1124_s13 = scalar_lea.hbm %s1490_s5, 512 }
 0x200   : > { %p1121_p9 = scmp.ne.s32.totalorder %s1437_s16, %s1120_s30  ;;  %p1125_p13 = scmp.lt.s32.totalorder %s1437_s16, %s1490_s5 }
 0x201   : > { %p1126_p7 = scmp.lt.s32.totalorder %s1124_s13, %s1120_s30 }
 0x202   : > { %p1122_p4 = pnand %p1121_p9, %p1333_p12 }
 0x203   : > { %p1127_p2 = por %p1126_p7, %p1125_p13 }
 0x204   : > { %p1123_p3 = pneg %p1122_p4 }
 0x206   : > { %p1128_p11 = pnand %p1127_p2, %p1123_p3 }
 0x208   : > { %1131 = shalt.err (!%p1128_p11)
}
 0x209   : > { %s1205_s7 = smov 128   ;;  %s1206_s9 = smov 8  }
 0x20a   : > { %898 = dma.vmem_to_hbm [thread:$0]  (%p1333_p12), %s1432_s29, 256, %s1437_s16, %s643_s1, %s1205_s7, %s1205_s7, %s1206_s9  }
 0x20b PF: > { %s673_s17 = sand.u32 1, %s1174_s18   ;;  %p1519_p10 = scmp.ne.s32.totalorder %s1509_s11, 0 }
 0x20c   : > { %p1520_p0 = scmp.ge.s32.totalorder %s1194_s23, 2  ;;  %s674_s24 = scalar_lea.sflag [#allocation5], %s673_s17 }
 0x20e   : > { %p915_p8 = pnand %p1520_p0, %p1519_p10 }
 0x210   : > { %p916_p5 = pneg %p915_p8 }
 0x212   : > { %1169 = dma.done.wait (%p916_p5), %s674_s24, 256  }
 0x213   : > { %1171 = vsyncadd (%p916_p5), %s674_s24, 4294967040  ;;  %s25_s23 = sadd.s32 1, %s1194_s23   ;;  %s1521_s10 = sld [smem:[#allocation18_spill]] }
 0x214   : > { %p22_p1 = scmp.ge.s32.totalorder %s25_s23, 4   ;;  %s1522_s21 = sld [smem:[#allocation16_spill]] }
 0x215   : > { %s1523_s22 = sld [smem:[#allocation17_spill]]  ;;  %s1524_s18 = smov %s1178_s19 }
 0x216   : > { %s1525_s19 = smov %s1182_s20  ;;  %24 = sbr.rel (!%p22_p1) target bundleno = 12 (0xc), region = 121 }
 0x219   : > { %s1526_s20 = smov %s1521_s10 }
 0x21b   :  { %679 = vsyncpa [#allocation4], 1 }
 0x21c   :  { %681 = vsyncpa [#allocation4 + $0x1], 1 }
 0x21d   :  { %682 = vsyncpa [#allocation7], 1 }
 0x21e   :  { %684 = vsyncpa [#allocation7 + $0x1], 1 }
 0x21f   :  { %685 = vsyncpa [#allocation10], 1 }
 0x220   :  { %686 = vsyncpa [#allocation5], 1 }
 0x221   :  { %688 = vsyncpa [#allocation5 + $0x1], 1 }

</bundles_post_ra>
